<compile_context>
chip_gen: v7x
topology: tpu7x:2x2x1
jax: 0.10.0
libtpu: 0.0.40
codegen_flags: <defaults>
</compile_context>

<pallas_src>
import functools

import jax
import jax.numpy as jnp
from jax.experimental import pallas as pl
from jax.experimental.pallas import tpu as pltpu

LANES = 128
SUBLANES = 8
MAX_TILE_ROWS = 4096            # (4096, 128) f32 = 2 MiB per pipeline buffer.
ROW_ALIGN = 32                  # keeps block legal for f32 / bf16 / int8 tiling
NUM_CORES = 2                   # v7x: 2 TCs; harmless on single-core v5e/v6e
VMEM_LIMIT_BYTES = 32 * 1024 * 1024


def _round_up(x, m):
    return -(-x // m) * m


def _accumulate(x, t, inter_acc, psum_acc, tsum_acc, bce_acc, valid=None):
    """Sigmoid + BCE for one tile, accumulated into (8, 128) vreg lane sums."""
    x = x.astype(jnp.float32)
    t = t.astype(jnp.float32)
    if valid is not None:
        x = jnp.where(valid, x, 0.0)
        t = jnp.where(valid, t, 0.0)

    # One exp + one log1p per element (shared between sigmoid and BCE); the
    # divide is an EUP approx reciprocal + one Newton step (~f32 accurate,
    # fewer VALU ops than a full divide).
    e = jnp.exp(-jnp.abs(x))
    den = 1.0 + e
    r = pl.reciprocal(den, approx=True)
    r = r * (2.0 - den * r)                              # Newton refine
    p = jnp.where(x >= 0.0, 1.0, e) * r                  # == sigmoid(x)
    bce = jnp.maximum(x, 0.0) - t * x + jnp.log1p(e)     # == BCE(sigmoid(x), t)

    if valid is not None:
        vf = valid.astype(jnp.float32)
        p = p * vf            # t already zeroed where invalid -> inter/tsum ok
        bce = bce * vf

    shape3 = (-1, SUBLANES, LANES)
    inter_acc[...] += jnp.sum((p * t).reshape(shape3), axis=0)
    psum_acc[...] += jnp.sum(p.reshape(shape3), axis=0)
    tsum_acc[...] += jnp.sum(t.reshape(shape3), axis=0)
    bce_acc[...] += jnp.sum(bce.reshape(shape3), axis=0)


def _dice_bce_kernel(x_ref, t_ref, o_ref,
                     inter_acc, psum_acc, tsum_acc, bce_acc,
                     *, n_rows, block_rows, blocks_per_core):
    c = pl.program_id(0)                 # TensorCore split ("parallel")
    i = pl.program_id(1)                 # reduction sweep ("arbitrary")

    @pl.when(i == 0)
    def _init():
        inter_acc[...] = jnp.zeros_like(inter_acc)
        psum_acc[...] = jnp.zeros_like(psum_acc)
        tsum_acc[...] = jnp.zeros_like(tsum_acc)
        bce_acc[...] = jnp.zeros_like(bce_acc)

    gb = c * blocks_per_core + i         # nominal (un-clamped) global block
    start_row = gb * block_rows
    is_full = start_row + block_rows <= n_rows

    @pl.when(is_full)
    def _fast():                         # hot path: no mask, full-vreg math
        _accumulate(x_ref[...], t_ref[...],
                    inter_acc, psum_acc, tsum_acc, bce_acc)

    @pl.when(jnp.logical_not(is_full))
    def _tail():                         # cold path: ragged / overrun block(s)
        row = (jax.lax.broadcasted_iota(jnp.int32, (block_rows, LANES), 0)
               + start_row)
        _accumulate(x_ref[...], t_ref[...],
                    inter_acc, psum_acc, tsum_acc, bce_acc,
                    valid=row < n_rows)

    @pl.when(i == pl.num_programs(1) - 1)
    def _finalize():                     # per-core lane-dense partial sums
        o_ref[0, 0, :, :] = inter_acc[...]
        o_ref[0, 1, :, :] = psum_acc[...]
        o_ref[0, 2, :, :] = tsum_acc[...]
        o_ref[0, 3, :, :] = bce_acc[...]


def _partial_sums(x2, t2, n_rows):
    """Run the kernel over the (n_rows, 128) prefix; return (4,) sums."""
    block_rows = min(MAX_TILE_ROWS,
                     _round_up(pl.cdiv(n_rows, NUM_CORES), ROW_ALIGN))
    blocks_total = pl.cdiv(n_rows, block_rows)
    blocks_per_core = pl.cdiv(blocks_total, NUM_CORES)

    def idx_map(c, i):
        # A core's trailing step may point past the last real block; clamp the
        # DMA index — the kernel's row mask zeroes that step's contribution.
        return (jnp.minimum(c * blocks_per_core + i, blocks_total - 1), 0)

    kernel = functools.partial(
        _dice_bce_kernel, n_rows=n_rows, block_rows=block_rows,
        blocks_per_core=blocks_per_core)

    partials = pl.pallas_call(
        kernel,
        out_shape=jax.ShapeDtypeStruct((NUM_CORES, 4, SUBLANES, LANES),
                                       jnp.float32),
        grid_spec=pltpu.PrefetchScalarGridSpec(
            num_scalar_prefetch=0,
            grid=(NUM_CORES, blocks_per_core),
            in_specs=[
                pl.BlockSpec((block_rows, LANES), idx_map),
                pl.BlockSpec((block_rows, LANES), idx_map),
            ],
            out_specs=pl.BlockSpec((1, 4, SUBLANES, LANES),
                                   lambda c, i: (c, 0, 0, 0)),
            scratch_shapes=[pltpu.VMEM((SUBLANES, LANES), jnp.float32)] * 4,
        ),
        compiler_params=pltpu.CompilerParams(
            dimension_semantics=("parallel", "arbitrary"),
            vmem_limit_bytes=VMEM_LIMIT_BYTES),
    )(x2, t2)
    # -> (inter, p_sum, t_sum, bce_sum) over cores / sublanes / lanes.
    return jnp.sum(partials, axis=(0, 2, 3))


def dice_bce_loss(inputs, targets, smooth=1.0):
    """Equivalent of DiceBCELoss.forward(inputs, targets, smooth)."""
    x = jnp.ravel(inputs)             # free reshape; dtype preserved (bf16 ok)
    t = jnp.ravel(targets)
    n_valid = x.shape[0]
    n_rows = n_valid // LANES         # full lane-rows go through the kernel
    n_full = n_rows * LANES
    tail = n_valid - n_full           # < 128 leftover elements

    inter = jnp.float32(0.0)
    psum = jnp.float32(0.0)
    tsum = jnp.float32(0.0)
    bce_sum = jnp.float32(0.0)

    if n_rows > 0:
        if tail:
            # No jnp.pad of the full arrays; only the aligned prefix is fed to
            # the kernel.  TODO(synk): the prefix slice can still cost one XLA
            # copy; a manual-DMA (memory_space=pl.ANY) variant could read the
            # prefix fully in place.
            x2 = jax.lax.slice(x, (0,), (n_full,)).reshape(n_rows, LANES)
            t2 = jax.lax.slice(t, (0,), (n_full,)).reshape(n_rows, LANES)
        else:
            x2 = x.reshape(n_rows, LANES)      # pure view, no HBM traffic
            t2 = t.reshape(n_rows, LANES)
        inter, psum, tsum, bce_sum = _partial_sums(x2, t2, n_rows)

    if tail:
        # Tiny (<128 element) pure-JAX epilogue; reads only the tail.
        xt = x[n_full:].astype(jnp.float32)
        tt = t[n_full:].astype(jnp.float32)
        e = jnp.exp(-jnp.abs(xt))
        p = jnp.where(xt >= 0.0, 1.0, e) / (1.0 + e)
        b = jnp.maximum(xt, 0.0) - tt * xt + jnp.log1p(e)
        inter = inter + jnp.sum(p * tt)
        psum = psum + jnp.sum(p)
        tsum = tsum + jnp.sum(tt)
        bce_sum = bce_sum + jnp.sum(b)

    dice_loss = 1.0 - (2.0 * inter + smooth) / (psum + tsum + smooth)
    bce_mean = bce_sum / jnp.float32(n_valid)
    return 0.5 * bce_mean + 0.5 * dice_loss


def _reference(inputs, targets, smooth=1.0):
    # Faithful to the PyTorch module (sigmoid + clamped-log BCE, mean).
    p = jax.nn.sigmoid(inputs.astype(jnp.float32)).ravel()
    t = targets.ravel().astype(jnp.float32)
    inter = jnp.sum(p * t)
    dice = 1.0 - (2.0 * inter + smooth) / (jnp.sum(p) + jnp.sum(t) + smooth)
    log_p = jnp.maximum(jnp.log(p), -100.0)
    log_1mp = jnp.maximum(jnp.log1p(-p), -100.0)
    bce = jnp.mean(-(t * log_p + (1.0 - t) * log_1mp))
    return 0.5 * bce + 0.5 * dice


if __name__ == "__main__":
    key = jax.random.PRNGKey(0)
    k1, k2, k3, k4, k5, k6 = jax.random.split(key, 6)

    loss_fn = jax.jit(dice_bce_loss)

    # Segmentation-style inputs: logits + binary targets, NCHW (2, 4, 16, 16).
    inputs = jax.random.normal(k1, (2, 4, 16, 16), dtype=jnp.float32)
    targets = (jax.random.uniform(k2, (2, 4, 16, 16)) > 0.5).astype(jnp.float32)
    loss = loss_fn(inputs, targets)
    jax.block_until_ready(loss)
    ref = _reference(inputs, targets)
    assert jnp.allclose(loss, ref, rtol=1e-5, atol=1e-5), (loss, ref)

    # Ragged size: kernel on the aligned prefix + <128-element JAX tail.
    inputs2 = jax.random.normal(k3, (3, 50, 129), dtype=jnp.float32)
    targets2 = (jax.random.uniform(k4, (3, 50, 129)) > 0.5).astype(jnp.float32)
    loss2 = loss_fn(inputs2, targets2)
    jax.block_until_ready(loss2)
    ref2 = _reference(inputs2, targets2)
    assert jnp.allclose(loss2, ref2, rtol=1e-5, atol=1e-5), (loss2, ref2)

    # Tiny input (< 128 elements): pure-JAX fallback path.
    inputs3 = jax.random.normal(k5, (3, 5, 7), dtype=jnp.float32)
    targets3 = (jax.random.uniform(k6, (3, 5, 7)) > 0.5).astype(jnp.float32)
    loss3 = loss_fn(inputs3, targets3)
    jax.block_until_ready(loss3)
    ref3 = _reference(inputs3, targets3)
    assert jnp.allclose(loss3, ref3, rtol=1e-5, atol=1e-5), (loss3, ref3)

    print("KERNEL_OK")
</pallas_src>

<mosaic_0001>
module attributes {stable_mosaic.version = 11 : i64} {
  func.func @_dice_bce_kernel(%arg0: i32, %arg1: i32, %arg2: memref<32x128xf32, #tpu.memory_space<vmem>>, %arg3: memref<32x128xf32, #tpu.memory_space<vmem>>, %arg4: memref<1x4x8x128xf32, #tpu.memory_space<vmem>>, %arg5: memref<8x128xf32, #tpu.memory_space<vmem>>, %arg6: memref<8x128xf32, #tpu.memory_space<vmem>>, %arg7: memref<8x128xf32, #tpu.memory_space<vmem>>, %arg8: memref<8x128xf32, #tpu.memory_space<vmem>>) attributes {dimension_semantics = [#tpu.dimension_semantics<parallel>, #tpu.dimension_semantics<arbitrary>], iteration_bounds = array<i64: 2, 1>, scalar_prefetch = 0 : i64, scratch_operands = 4 : i64, tpu.core_type = #tpu.core_type<tc>, window_params = [{transform_indices = @transform_0, window_bounds = array<i64: 32, 128>}, {transform_indices = @transform_1, window_bounds = array<i64: 32, 128>}, {transform_indices = @transform_2, window_bounds = array<i64: 1, 4, 8, 128>}]} {
    %c0_i32 = arith.constant 0 : i32
    %0 = arith.cmpi eq, %arg1, %c0_i32 : i32
    %1 = arith.extui %0 : i1 to i32
    %c0_i32_0 = arith.constant 0 : i32
    %2 = arith.cmpi ne, %1, %c0_i32_0 : i32
    scf.if %2 {
      %cst = arith.constant 0.000000e+00 : f32
      %16 = vector.broadcast %cst : f32 to vector<8x128xf32>
      %c0 = arith.constant 0 : index
      %c0_6 = arith.constant 0 : index
      %17 = vector.load %arg5[%c0, %c0_6] : memref<8x128xf32, #tpu.memory_space<vmem>>, vector<8x128xf32>
      tpu.vector_store %arg5[%c0, %c0_6], %16 {strides = array<i32>} : memref<8x128xf32, #tpu.memory_space<vmem>>, vector<8x128xf32>,
      %cst_7 = arith.constant 0.000000e+00 : f32
      %18 = vector.broadcast %cst_7 : f32 to vector<8x128xf32>
      %c0_8 = arith.constant 0 : index
      %c0_9 = arith.constant 0 : index
      %19 = vector.load %arg6[%c0_8, %c0_9] : memref<8x128xf32, #tpu.memory_space<vmem>>, vector<8x128xf32>
      tpu.vector_store %arg6[%c0_8, %c0_9], %18 {strides = array<i32>} : memref<8x128xf32, #tpu.memory_space<vmem>>, vector<8x128xf32>,
      %cst_10 = arith.constant 0.000000e+00 : f32
      %20 = vector.broadcast %cst_10 : f32 to vector<8x128xf32>
      %c0_11 = arith.constant 0 : index
      %c0_12 = arith.constant 0 : index
      %21 = vector.load %arg7[%c0_11, %c0_12] : memref<8x128xf32, #tpu.memory_space<vmem>>, vector<8x128xf32>
      tpu.vector_store %arg7[%c0_11, %c0_12], %20 {strides = array<i32>} : memref<8x128xf32, #tpu.memory_space<vmem>>, vector<8x128xf32>,
      %cst_13 = arith.constant 0.000000e+00 : f32
      %22 = vector.broadcast %cst_13 : f32 to vector<8x128xf32>
      %c0_14 = arith.constant 0 : index
      %c0_15 = arith.constant 0 : index
      %23 = vector.load %arg8[%c0_14, %c0_15] : memref<8x128xf32, #tpu.memory_space<vmem>>, vector<8x128xf32>
      tpu.vector_store %arg8[%c0_14, %c0_15], %22 {strides = array<i32>} : memref<8x128xf32, #tpu.memory_space<vmem>>, vector<8x128xf32>,
    } else {
    }
    %c1_i32 = arith.constant 1 : i32
    %3 = arith.muli %arg0, %c1_i32 : i32
    %4 = arith.addi %3, %arg1 : i32
    %c32_i32 = arith.constant 32 : i32
    %5 = arith.muli %4, %c32_i32 : i32
    %c32_i32_1 = arith.constant 32 : i32
    %6 = arith.addi %5, %c32_i32_1 : i32
    %c16_i32 = arith.constant 16 : i32
    %7 = arith.cmpi sle, %6, %c16_i32 : i32
    %8 = arith.extui %7 : i1 to i32
    %c0_i32_2 = arith.constant 0 : i32
    %9 = arith.cmpi ne, %8, %c0_i32_2 : i32
    scf.if %9 {
      %c0 = arith.constant 0 : index
      %c0_6 = arith.constant 0 : index
      %16 = vector.load %arg2[%c0, %c0_6] : memref<32x128xf32, #tpu.memory_space<vmem>>, vector<32x128xf32>
      %c0_7 = arith.constant 0 : index
      %c0_8 = arith.constant 0 : index
      %17 = vector.load %arg3[%c0_7, %c0_8] : memref<32x128xf32, #tpu.memory_space<vmem>>, vector<32x128xf32>
      %18 = math.absf %16 : vector<32x128xf32>
      %cst = arith.constant 0.000000e+00 : f32
      %19 = vector.broadcast %cst : f32 to vector<32x128xf32>
      %20 = arith.subf %19, %18 : vector<32x128xf32>
      %21 = math.exp %20 : vector<32x128xf32>
      %cst_9 = arith.constant 1.000000e+00 : f32
      %22 = vector.broadcast %cst_9 : f32 to vector<32x128xf32>
      %23 = arith.addf %22, %21 : vector<32x128xf32>
      %24 = tpu.reciprocal %23 {approx = true} : vector<32x128xf32> -> vector<32x128xf32>
      %25 = arith.mulf %23, %24 : vector<32x128xf32>
      %cst_10 = arith.constant 2.000000e+00 : f32
      %26 = vector.broadcast %cst_10 : f32 to vector<32x128xf32>
      %27 = arith.subf %26, %25 : vector<32x128xf32>
      %28 = arith.mulf %24, %27 : vector<32x128xf32>
      %cst_11 = arith.constant 0.000000e+00 : f32
      %29 = vector.broadcast %cst_11 : f32 to vector<32x128xf32>
      %30 = arith.cmpf oge, %16, %29 : vector<32x128xf32>
      %cst_12 = arith.constant 1.000000e+00 : f32
      %31 = vector.broadcast %cst_12 : f32 to vector<32x128xf32>
      %32 = arith.select %30, %31, %21 : vector<32x128xi1>, vector<32x128xf32>
      %33 = arith.mulf %32, %28 : vector<32x128xf32>
      %cst_13 = arith.constant 0.000000e+00 : f32
      %34 = vector.broadcast %cst_13 : f32 to vector<32x128xf32>
      %35 = arith.maximumf %16, %34 : vector<32x128xf32>
      %36 = arith.mulf %17, %16 : vector<32x128xf32>
      %37 = arith.subf %35, %36 : vector<32x128xf32>
      %38 = math.log1p %21 : vector<32x128xf32>
      %39 = arith.addf %37, %38 : vector<32x128xf32>
      %c0_14 = arith.constant 0 : index
      %c0_15 = arith.constant 0 : index
      %40 = vector.load %arg5[%c0_14, %c0_15] : memref<8x128xf32, #tpu.memory_space<vmem>>, vector<8x128xf32>
      %41 = arith.mulf %33, %17 : vector<32x128xf32>
      %42 = vector.shape_cast %41 : vector<32x128xf32> to vector<4x8x128xf32>
      %cst_16 = arith.constant dense<0.000000e+00> : vector<8x128xf32>
      %43 = vector.multi_reduction <add>, %42, %cst_16 [0] : vector<4x8x128xf32> to vector<8x128xf32>
      %44 = arith.addf %40, %43 : vector<8x128xf32>
      %c0_17 = arith.constant 0 : index
      %c0_18 = arith.constant 0 : index
      %45 = vector.load %arg5[%c0_17, %c0_18] : memref<8x128xf32, #tpu.memory_space<vmem>>, vector<8x128xf32>
      tpu.vector_store %arg5[%c0_17, %c0_18], %44 {strides = array<i32>} : memref<8x128xf32, #tpu.memory_space<vmem>>, vector<8x128xf32>,
      %c0_19 = arith.constant 0 : index
      %c0_20 = arith.constant 0 : index
      %46 = vector.load %arg6[%c0_19, %c0_20] : memref<8x128xf32, #tpu.memory_space<vmem>>, vector<8x128xf32>
      %47 = vector.shape_cast %33 : vector<32x128xf32> to vector<4x8x128xf32>
      %cst_21 = arith.constant dense<0.000000e+00> : vector<8x128xf32>
      %48 = vector.multi_reduction <add>, %47, %cst_21 [0] : vector<4x8x128xf32> to vector<8x128xf32>
      %49 = arith.addf %46, %48 : vector<8x128xf32>
      %c0_22 = arith.constant 0 : index
      %c0_23 = arith.constant 0 : index
      %50 = vector.load %arg6[%c0_22, %c0_23] : memref<8x128xf32, #tpu.memory_space<vmem>>, vector<8x128xf32>
      tpu.vector_store %arg6[%c0_22, %c0_23], %49 {strides = array<i32>} : memref<8x128xf32, #tpu.memory_space<vmem>>, vector<8x128xf32>,
      %c0_24 = arith.constant 0 : index
      %c0_25 = arith.constant 0 : index
      %51 = vector.load %arg7[%c0_24, %c0_25] : memref<8x128xf32, #tpu.memory_space<vmem>>, vector<8x128xf32>
      %52 = vector.shape_cast %17 : vector<32x128xf32> to vector<4x8x128xf32>
      %cst_26 = arith.constant dense<0.000000e+00> : vector<8x128xf32>
      %53 = vector.multi_reduction <add>, %52, %cst_26 [0] : vector<4x8x128xf32> to vector<8x128xf32>
      %54 = arith.addf %51, %53 : vector<8x128xf32>
      %c0_27 = arith.constant 0 : index
      %c0_28 = arith.constant 0 : index
      %55 = vector.load %arg7[%c0_27, %c0_28] : memref<8x128xf32, #tpu.memory_space<vmem>>, vector<8x128xf32>
      tpu.vector_store %arg7[%c0_27, %c0_28], %54 {strides = array<i32>} : memref<8x128xf32, #tpu.memory_space<vmem>>, vector<8x128xf32>,
      %c0_29 = arith.constant 0 : index
      %c0_30 = arith.constant 0 : index
      %56 = vector.load %arg8[%c0_29, %c0_30] : memref<8x128xf32, #tpu.memory_space<vmem>>, vector<8x128xf32>
      %57 = vector.shape_cast %39 : vector<32x128xf32> to vector<4x8x128xf32>
      %cst_31 = arith.constant dense<0.000000e+00> : vector<8x128xf32>
      %58 = vector.multi_reduction <add>, %57, %cst_31 [0] : vector<4x8x128xf32> to vector<8x128xf32>
      %59 = arith.addf %56, %58 : vector<8x128xf32>
      %c0_32 = arith.constant 0 : index
      %c0_33 = arith.constant 0 : index
      %60 = vector.load %arg8[%c0_32, %c0_33] : memref<8x128xf32, #tpu.memory_space<vmem>>, vector<8x128xf32>
      tpu.vector_store %arg8[%c0_32, %c0_33], %59 {strides = array<i32>} : memref<8x128xf32, #tpu.memory_space<vmem>>, vector<8x128xf32>,
    } else {
    }
    %true = arith.constant true
    %10 = arith.xori %7, %true : i1
    %11 = arith.extui %10 : i1 to i32
    %c0_i32_3 = arith.constant 0 : i32
    %12 = arith.cmpi ne, %11, %c0_i32_3 : i32
    scf.if %12 {
      %16 = tpu.iota {dimensions = array<i32: 0>} : vector<32x128xi32>
      %17 = vector.broadcast %5 : i32 to vector<32x128xi32>
      %18 = arith.addi %16, %17 : vector<32x128xi32>
      %c0 = arith.constant 0 : index
      %c0_6 = arith.constant 0 : index
      %19 = vector.load %arg2[%c0, %c0_6] : memref<32x128xf32, #tpu.memory_space<vmem>>, vector<32x128xf32>
      %c0_7 = arith.constant 0 : index
      %c0_8 = arith.constant 0 : index
      %20 = vector.load %arg3[%c0_7, %c0_8] : memref<32x128xf32, #tpu.memory_space<vmem>>, vector<32x128xf32>
      %c16_i32_9 = arith.constant 16 : i32
      %21 = vector.broadcast %c16_i32_9 : i32 to vector<32x128xi32>
      %22 = arith.cmpi slt, %18, %21 : vector<32x128xi32>
      %cst = arith.constant 0.000000e+00 : f32
      %23 = vector.broadcast %cst : f32 to vector<32x128xf32>
      %24 = arith.select %22, %19, %23 : vector<32x128xi1>, vector<32x128xf32>
      %cst_10 = arith.constant 0.000000e+00 : f32
      %25 = vector.broadcast %cst_10 : f32 to vector<32x128xf32>
      %26 = arith.select %22, %20, %25 : vector<32x128xi1>, vector<32x128xf32>
      %27 = math.absf %24 : vector<32x128xf32>
      %cst_11 = arith.constant 0.000000e+00 : f32
      %28 = vector.broadcast %cst_11 : f32 to vector<32x128xf32>
      %29 = arith.subf %28, %27 : vector<32x128xf32>
      %30 = math.exp %29 : vector<32x128xf32>
      %cst_12 = arith.constant 1.000000e+00 : f32
      %31 = vector.broadcast %cst_12 : f32 to vector<32x128xf32>
      %32 = arith.addf %31, %30 : vector<32x128xf32>
      %33 = tpu.reciprocal %32 {approx = true} : vector<32x128xf32> -> vector<32x128xf32>
      %34 = arith.mulf %32, %33 : vector<32x128xf32>
      %cst_13 = arith.constant 2.000000e+00 : f32
      %35 = vector.broadcast %cst_13 : f32 to vector<32x128xf32>
      %36 = arith.subf %35, %34 : vector<32x128xf32>
      %37 = arith.mulf %33, %36 : vector<32x128xf32>
      %cst_14 = arith.constant 0.000000e+00 : f32
      %38 = vector.broadcast %cst_14 : f32 to vector<32x128xf32>
      %39 = arith.cmpf oge, %24, %38 : vector<32x128xf32>
      %cst_15 = arith.constant 1.000000e+00 : f32
      %40 = vector.broadcast %cst_15 : f32 to vector<32x128xf32>
      %41 = arith.select %39, %40, %30 : vector<32x128xi1>, vector<32x128xf32>
      %42 = arith.mulf %41, %37 : vector<32x128xf32>
      %cst_16 = arith.constant 0.000000e+00 : f32
      %43 = vector.broadcast %cst_16 : f32 to vector<32x128xf32>
      %44 = arith.maximumf %24, %43 : vector<32x128xf32>
      %45 = arith.mulf %26, %24 : vector<32x128xf32>
      %46 = arith.subf %44, %45 : vector<32x128xf32>
      %47 = math.log1p %30 : vector<32x128xf32>
      %48 = arith.addf %46, %47 : vector<32x128xf32>
      %49 = arith.extui %22 : vector<32x128xi1> to vector<32x128xi32>
      %50 = arith.sitofp %49 : vector<32x128xi32> to vector<32x128xf32>
      %51 = arith.mulf %42, %50 : vector<32x128xf32>
      %52 = arith.mulf %48, %50 : vector<32x128xf32>
      %c0_17 = arith.constant 0 : index
      %c0_18 = arith.constant 0 : index
      %53 = vector.load %arg5[%c0_17, %c0_18] : memref<8x128xf32, #tpu.memory_space<vmem>>, vector<8x128xf32>
      %54 = arith.mulf %51, %26 : vector<32x128xf32>
      %55 = vector.shape_cast %54 : vector<32x128xf32> to vector<4x8x128xf32>
      %cst_19 = arith.constant dense<0.000000e+00> : vector<8x128xf32>
      %56 = vector.multi_reduction <add>, %55, %cst_19 [0] : vector<4x8x128xf32> to vector<8x128xf32>
      %57 = arith.addf %53, %56 : vector<8x128xf32>
      %c0_20 = arith.constant 0 : index
      %c0_21 = arith.constant 0 : index
      %58 = vector.load %arg5[%c0_20, %c0_21] : memref<8x128xf32, #tpu.memory_space<vmem>>, vector<8x128xf32>
      tpu.vector_store %arg5[%c0_20, %c0_21], %57 {strides = array<i32>} : memref<8x128xf32, #tpu.memory_space<vmem>>, vector<8x128xf32>,
      %c0_22 = arith.constant 0 : index
      %c0_23 = arith.constant 0 : index
      %59 = vector.load %arg6[%c0_22, %c0_23] : memref<8x128xf32, #tpu.memory_space<vmem>>, vector<8x128xf32>
      %60 = vector.shape_cast %51 : vector<32x128xf32> to vector<4x8x128xf32>
      %cst_24 = arith.constant dense<0.000000e+00> : vector<8x128xf32>
      %61 = vector.multi_reduction <add>, %60, %cst_24 [0] : vector<4x8x128xf32> to vector<8x128xf32>
      %62 = arith.addf %59, %61 : vector<8x128xf32>
      %c0_25 = arith.constant 0 : index
      %c0_26 = arith.constant 0 : index
      %63 = vector.load %arg6[%c0_25, %c0_26] : memref<8x128xf32, #tpu.memory_space<vmem>>, vector<8x128xf32>
      tpu.vector_store %arg6[%c0_25, %c0_26], %62 {strides = array<i32>} : memref<8x128xf32, #tpu.memory_space<vmem>>, vector<8x128xf32>,
      %c0_27 = arith.constant 0 : index
      %c0_28 = arith.constant 0 : index
      %64 = vector.load %arg7[%c0_27, %c0_28] : memref<8x128xf32, #tpu.memory_space<vmem>>, vector<8x128xf32>
      %65 = vector.shape_cast %26 : vector<32x128xf32> to vector<4x8x128xf32>
      %cst_29 = arith.constant dense<0.000000e+00> : vector<8x128xf32>
      %66 = vector.multi_reduction <add>, %65, %cst_29 [0] : vector<4x8x128xf32> to vector<8x128xf32>
      %67 = arith.addf %64, %66 : vector<8x128xf32>
      %c0_30 = arith.constant 0 : index
      %c0_31 = arith.constant 0 : index
      %68 = vector.load %arg7[%c0_30, %c0_31] : memref<8x128xf32, #tpu.memory_space<vmem>>, vector<8x128xf32>
      tpu.vector_store %arg7[%c0_30, %c0_31], %67 {strides = array<i32>} : memref<8x128xf32, #tpu.memory_space<vmem>>, vector<8x128xf32>,
      %c0_32 = arith.constant 0 : index
      %c0_33 = arith.constant 0 : index
      %69 = vector.load %arg8[%c0_32, %c0_33] : memref<8x128xf32, #tpu.memory_space<vmem>>, vector<8x128xf32>
      %70 = vector.shape_cast %52 : vector<32x128xf32> to vector<4x8x128xf32>
      %cst_34 = arith.constant dense<0.000000e+00> : vector<8x128xf32>
      %71 = vector.multi_reduction <add>, %70, %cst_34 [0] : vector<4x8x128xf32> to vector<8x128xf32>
      %72 = arith.addf %69, %71 : vector<8x128xf32>
      %c0_35 = arith.constant 0 : index
      %c0_36 = arith.constant 0 : index
      %73 = vector.load %arg8[%c0_35, %c0_36] : memref<8x128xf32, #tpu.memory_space<vmem>>, vector<8x128xf32>
      tpu.vector_store %arg8[%c0_35, %c0_36], %72 {strides = array<i32>} : memref<8x128xf32, #tpu.memory_space<vmem>>, vector<8x128xf32>,
    } else {
    }
    %c0_i32_4 = arith.constant 0 : i32
    %13 = arith.cmpi eq, %arg1, %c0_i32_4 : i32
    %14 = arith.extui %13 : i1 to i32
    %c0_i32_5 = arith.constant 0 : i32
    %15 = arith.cmpi ne, %14, %c0_i32_5 : i32
    scf.if %15 {
      %c0 = arith.constant 0 : index
      %c0_6 = arith.constant 0 : index
      %16 = vector.load %arg5[%c0, %c0_6] : memref<8x128xf32, #tpu.memory_space<vmem>>, vector<8x128xf32>
      %c0_7 = arith.constant 0 : index
      %c0_8 = arith.constant 0 : index
      %c0_9 = arith.constant 0 : index
      %c0_10 = arith.constant 0 : index
      %17 = vector.load %arg4[%c0_7, %c0_8, %c0_9, %c0_10] : memref<1x4x8x128xf32, #tpu.memory_space<vmem>>, vector<1x1x8x128xf32>
      %18 = vector.shape_cast %17 : vector<1x1x8x128xf32> to vector<8x128xf32>
      %19 = vector.shape_cast %16 : vector<8x128xf32> to vector<1x1x8x128xf32>
      tpu.vector_store %arg4[%c0_7, %c0_8, %c0_9, %c0_10], %19 {strides = array<i32>} : memref<1x4x8x128xf32, #tpu.memory_space<vmem>>, vector<1x1x8x128xf32>,
      %c0_11 = arith.constant 0 : index
      %c0_12 = arith.constant 0 : index
      %20 = vector.load %arg6[%c0_11, %c0_12] : memref<8x128xf32, #tpu.memory_space<vmem>>, vector<8x128xf32>
      %c0_13 = arith.constant 0 : index
      %c1 = arith.constant 1 : index
      %c0_14 = arith.constant 0 : index
      %c0_15 = arith.constant 0 : index
      %21 = vector.load %arg4[%c0_13, %c1, %c0_14, %c0_15] : memref<1x4x8x128xf32, #tpu.memory_space<vmem>>, vector<1x1x8x128xf32>
      %22 = vector.shape_cast %21 : vector<1x1x8x128xf32> to vector<8x128xf32>
      %23 = vector.shape_cast %20 : vector<8x128xf32> to vector<1x1x8x128xf32>
      tpu.vector_store %arg4[%c0_13, %c1, %c0_14, %c0_15], %23 {strides = array<i32>} : memref<1x4x8x128xf32, #tpu.memory_space<vmem>>, vector<1x1x8x128xf32>,
      %c0_16 = arith.constant 0 : index
      %c0_17 = arith.constant 0 : index
      %24 = vector.load %arg7[%c0_16, %c0_17] : memref<8x128xf32, #tpu.memory_space<vmem>>, vector<8x128xf32>
      %c0_18 = arith.constant 0 : index
      %c2 = arith.constant 2 : index
      %c0_19 = arith.constant 0 : index
      %c0_20 = arith.constant 0 : index
      %25 = vector.load %arg4[%c0_18, %c2, %c0_19, %c0_20] : memref<1x4x8x128xf32, #tpu.memory_space<vmem>>, vector<1x1x8x128xf32>
      %26 = vector.shape_cast %25 : vector<1x1x8x128xf32> to vector<8x128xf32>
      %27 = vector.shape_cast %24 : vector<8x128xf32> to vector<1x1x8x128xf32>
      tpu.vector_store %arg4[%c0_18, %c2, %c0_19, %c0_20], %27 {strides = array<i32>} : memref<1x4x8x128xf32, #tpu.memory_space<vmem>>, vector<1x1x8x128xf32>,
      %c0_21 = arith.constant 0 : index
      %c0_22 = arith.constant 0 : index
      %28 = vector.load %arg8[%c0_21, %c0_22] : memref<8x128xf32, #tpu.memory_space<vmem>>, vector<8x128xf32>
      %c0_23 = arith.constant 0 : index
      %c3 = arith.constant 3 : index
      %c0_24 = arith.constant 0 : index
      %c0_25 = arith.constant 0 : index
      %29 = vector.load %arg4[%c0_23, %c3, %c0_24, %c0_25] : memref<1x4x8x128xf32, #tpu.memory_space<vmem>>, vector<1x1x8x128xf32>
      %30 = vector.shape_cast %29 : vector<1x1x8x128xf32> to vector<8x128xf32>
      %31 = vector.shape_cast %28 : vector<8x128xf32> to vector<1x1x8x128xf32>
      tpu.vector_store %arg4[%c0_23, %c3, %c0_24, %c0_25], %31 {strides = array<i32>} : memref<1x4x8x128xf32, #tpu.memory_space<vmem>>, vector<1x1x8x128xf32>,
    } else {
    }
    return
  }
  func.func @transform_0(%arg0: i32, %arg1: i32) -> (i32, i32) {
    %c1_i32 = arith.constant 1 : i32
    %0 = arith.muli %arg0, %c1_i32 : i32
    %1 = arith.addi %0, %arg1 : i32
    %c0_i32 = arith.constant 0 : i32
    %2 = arith.minsi %1, %c0_i32 : i32
    %c0_i32_0 = arith.constant 0 : i32
    %c0_i32_1 = arith.constant 0 : i32
    return %2, %c0_i32_0 : i32, i32
  }
  func.func @transform_1(%arg0: i32, %arg1: i32) -> (i32, i32) {
    %c1_i32 = arith.constant 1 : i32
    %0 = arith.muli %arg0, %c1_i32 : i32
    %1 = arith.addi %0, %arg1 : i32
    %c0_i32 = arith.constant 0 : i32
    %2 = arith.minsi %1, %c0_i32 : i32
    %c0_i32_0 = arith.constant 0 : i32
    %c0_i32_1 = arith.constant 0 : i32
    return %2, %c0_i32_0 : i32, i32
  }
  func.func @transform_2(%arg0: i32, %arg1: i32) -> (i32, i32, i32, i32) {
    %c0_i32 = arith.constant 0 : i32
    %c0_i32_0 = arith.constant 0 : i32
    %c0_i32_1 = arith.constant 0 : i32
    %c0_i32_2 = arith.constant 0 : i32
    return %arg0, %c0_i32, %c0_i32_0, %c0_i32_1 : i32, i32, i32, i32
  }
}

</mosaic_0001>

<bundles_post_ra>
// kernel: dice_bce_loss.1
= control target key start
LH: loop header
LB: loop body
LE: loop exit
PB: predicated region body
PF: predicated region fallthrough
CT: control target
= control target key end

     0   :  { %s799_s9 = smov 0   ;;  %s801_s10 = smov 0   ;;  %s1109_s0 = inlined_call_operand.vmem [shape: f32[16,128], index: 0, kind: input, shape index: {}]   ;;  %s1110_s1 = inlined_call_operand.vmem [shape: f32[16,128], index: 1, kind: input, shape index: {}]   ;;  %s1111_s2 = inlined_call_operand.vmem [shape: f32[2,4,8,128], index: 2, kind: output, shape index: {}]  }
   0x1   :  { %s803_s11 = smov 0  }
   0x2 LB: > { %s24_s12 = sadd.s32 1, %s776_s10  ;;  %p664_p0 = scmp.ge.s32.totalorder %s780_s11, 1  ;;  %s780_s11 = sphi %s803_s11, %s12_s11   ;;  %s776_s10 = sphi %s801_s10, %s1129_s10   ;;  %s772_s9 = sphi %s799_s9, %s1128_s9  }
   0x3   : > { %p26_p1 = scmp.ge.s32.totalorder %s24_s12, 2  ;;  %p168_p2 = scmp.lt.s32.totalorder %s780_s11, 3 }
   0x5   : > { %s1131_s12 = smov (%p26_p1, %s24_s12), 0  ;;  %p169_p3 = pnand %p664_p0, %p168_p2 }
   0x6   : > { %p206_p4 = scmp.lt.s32.totalorder (!%p169_p3), %s772_s9, 0  ;;  %p237_p5 = scmp.lt.s32.totalorder (!%p169_p3), %s772_s9, 1  ;;  %v782_v0 = vmov (!%p169_p3), 0.0  }
   0x7   : > { %172 = sbr.rel (%p169_p3) target bundleno = 145 (0x91), region = 28  ;;  %246 = vst [vmem:[#allocation2] sm:$0xff] (!%p169_p3), %v782_v0  ;;  %247 = vst [vmem:[#allocation3] sm:$0xff] (!%p169_p3), %v782_v0  ;;  %s671_s13 = sshll.u32 (!%p169_p3), %s772_s9, 5 }
   0x8   : > { %248 = vst [vmem:[#allocation4] sm:$0xff] (!%p169_p3), %v782_v0  ;;  %249 = vst [vmem:[#allocation5] sm:$0xff] (!%p169_p3), %v782_v0  ;;  %s826_s17 = sadd.s32 (!%p169_p3), 32, %s671_s13 }
   0x9   : > { %p672_p7 = scmp.gt.s32.totalorder (!%p169_p3), %s826_s17, 16 }
   0xe   : > { %s207_s14 = scalar_select %p206_p4, %s772_s9, 0 }
   0xf   : > { %s238_s15 = scalar_select %p237_p5, %s772_s9, 1 }
  0x10   : > { %s665_s16 = sshll.u32 %s207_s14, 2  ;;  %256 = sbr.rel (%p672_p7) target bundleno = 74 (0x4a), region = 36  ;;  %v381_v20 = vld [vmem:[#allocation4] sm:$0xff] (!%p672_p7) }
  0x11   : > { %p211_p6 = scmp.lt.s32.totalorder %s665_s16, 1  ;;  %s683_s18 = sshll.u32 %s238_s15, 5 }
  0x12   : > { %s831_s21 = scalar_lea.vmem %s1111_s2, %s683_s18 }
  0x13   : > { %s1133_s16 = smov (!%p211_p6, %s665_s16), 1 }
  0x14   : > { %s666_s22 = sshll.u32 %s1133_s16, 3 }
  0x15   : > { %s836_s25 = scalar_lea.vmem %s1109_s0, %s666_s22  ;;  %s841_s28 = scalar_lea.vmem %s1110_s1, %s666_s22 }
  0x16   : > { %v845_v1 = vld [vmem:[%s836_s25] sm:$0xff] (!%p672_p7)  ;;  %v848_v2 = vld [vmem:[%s836_s25 + $0x8] sm:$0xff] (!%p672_p7)  ;;  %v851_v3 = vld [vmem:[%s836_s25 + $0x10] sm:$0xff] (!%p672_p7) }
  0x17   : > { %v854_v4 = vld [vmem:[%s836_s25 + $0x18] sm:$0xff]  ;;  %v857_v5 = vld [vmem:[%s841_s28] sm:$0xff]  ;;  %v860_v6 = vld [vmem:[%s841_s28 + $0x8] sm:$0xff]  ;;  %v265_v7 = vand.u32 2147483647, %v845_v1  ;;  %v313_v35 = vmax.f32 %v845_v1, 0.0 }
  0x18   : > { %v266_v8 = vand.u32 2147483647, %v848_v2  ;;  %v267_v9 = vand.u32 2147483647, %v851_v3  ;;  %v382_v10 = vadd.f32 %v860_v6, %v857_v5  ;;  %v868_v11 = vld [vmem:[%s841_s28 + $0x10] sm:$0xff]  ;;  %v873_v17 = vld [vmem:[%s841_s28 + $0x18] sm:$0xff]  ;;  %v317_v34 = vmul.f32 %v857_v5, %v845_v1 }
  0x19   : > { %v268_v12 = vand.u32 2147483647, %v854_v4  ;;  %v269_v13 = vsub.f32 0.0, %v265_v7  ;;  %v314_v36 = vmax.f32 %v848_v2, 0.0  ;;  %v315_v37 = vmax.f32 %v851_v3, 0.0 }
  0x1a   : > { %v270_v14 = vsub.f32 0.0, %v266_v8  ;;  %v271_v15 = vsub.f32 0.0, %v267_v9  ;;  %v383_v16 = vadd.f32 %v382_v10, %v868_v11  ;;  %v316_v38 = vmax.f32 %v854_v4, 0.0 }
  0x1b   : > { %v272_v18 = vsub.f32 0.0, %v268_v12  ;;  %v273_v19 = vmul.f32 1.442695, %v269_v13  ;;  %v318_v39 = vmul.f32 %v860_v6, %v848_v2  ;;  %v319_v41 = vmul.f32 %v868_v11, %v851_v3 }
  0x1c   : > { %v275_v21 = vmul.f32 1.442695, %v270_v14  ;;  %v277_v22 = vmul.f32 1.442695, %v271_v15  ;;  %v384_v23 = vadd.f32 %v383_v16, %v873_v17  ;;  %v320_v42 = vmul.f32 %v873_v17, %v854_v4 }
  0x1d   : > { %710 = vpow2.f32 %v273_v19  ;;  %v279_v24 = vmul.f32 1.442695, %v272_v18  ;;  %vm301_vm0 = vcmp.ge.f32.partialorder %v845_v1, 0.0  ;;  %vm302_vm1 = vcmp.ge.f32.partialorder %v848_v2, 0.0 }
  0x1e   : > { %712 = vpow2.f32 %v275_v21  ;;  %v385_v25 = vadd.f32 %v384_v23, %v381_v20  ;;  %vm303_vm2 = vcmp.ge.f32.partialorder %v851_v3, 0.0  ;;  %vm304_vm3 = vcmp.ge.f32.partialorder %v854_v4, 0.0 }
  0x1f   : > { %714 = vpow2.f32 %v277_v22  ;;  %v321_v44 = vsub.f32 %v313_v35, %v317_v34  ;;  %v322_v46 = vsub.f32 %v314_v36, %v318_v39  ;;  %v323_v50 = vsub.f32 %v315_v37, %v319_v41 }
  0x20   : > { %716 = vpow2.f32 %v279_v24  ;;  %386 = vst [vmem:[#allocation4] sm:$0xff] %v385_v25  ;;  %v324_v51 = vsub.f32 %v316_v38, %v320_v42 }
  0x27   : > { %v711_v26 = vpop.eup %710 }
  0x28   : > { %v713_v27 = vpop.eup %712  ;;  %v281_v28 = vadd.f32 1.0, %v711_v26  ;;  %v328_v40 = vmul.f32 -0.5, %v711_v26  ;;  %v331_v48 = vand.u32 2147483647, %v711_v26  ;;  %v305_v55 = vsel %vm301_vm0, 1.0, %v711_v26 }
  0x29   : > { %v876_v29 = vpop.eup %714  ;;  %v282_v30 = vadd.f32 1.0, %v713_v27  ;;  %v337_v43 = vmul.f32 -0.5, %v713_v27  ;;  %v340_v53 = vand.u32 2147483647, %v713_v27  ;;  %v306_v56 = vsel %vm302_vm1, 1.0, %v713_v27 }
  0x2a   : > { %v878_v31 = vpop.eup %716  ;;  %v283_v32 = vadd.f32 1.0, %v876_v29  ;;  %718 = vrcp.f32 %v281_v28  ;;  %v346_v45 = vmul.f32 -0.5, %v876_v29  ;;  %v329_v47 = vadd.f32 1.0, %v328_v40 }
  0x2b   : > { %v284_v33 = vadd.f32 1.0, %v878_v31  ;;  %720 = vrcp.f32 %v282_v30  ;;  %v355_v49 = vmul.f32 -0.5, %v878_v31  ;;  %v338_v52 = vadd.f32 1.0, %v337_v43 }
  0x2c   : > { %722 = vrcp.f32 %v283_v32  ;;  %v349_v57 = vand.u32 2147483647, %v876_v29  ;;  %v358_v58 = vand.u32 2147483647, %v878_v31  ;;  %v307_v61 = vsel %vm303_vm2, 1.0, %v876_v29 }
  0x2d   : > { %724 = vrcp.f32 %v284_v33  ;;  %v308_v62 = vsel %vm304_vm3, 1.0, %v878_v31  ;;  %v347_v63 = vadd.f32 1.0, %v346_v45  ;;  %v330_v7 = vmul.f32 %v711_v26, %v329_v47 }
  0x2e   : > { %726 = vlog2.f32 %v281_v28  ;;  %vm912_vm4 = vcmp.lt.f32.partialorder %v331_v48, 0.0004427343  ;;  %v356_v8 = vadd.f32 1.0, %v355_v49  ;;  %v339_v13 = vmul.f32 %v713_v27, %v338_v52 }
  0x2f   : > { %728 = vlog2.f32 %v282_v30  ;;  %vm916_vm5 = vcmp.lt.f32.partialorder %v340_v53, 0.0004427343  ;;  %vm920_vm6 = vcmp.lt.f32.partialorder %v349_v57, 0.0004427343  ;;  %vm924_vm7 = vcmp.lt.f32.partialorder %v358_v58, 0.0004427343 }
  0x30   : > { %730 = vlog2.f32 %v283_v32  ;;  %v348_v23 = vmul.f32 %v876_v29, %v347_v63 }
  0x31   : > { %732 = vlog2.f32 %v284_v33 }
  0x34   : > { %v719_v54 = vpop.eup %718 }
  0x35   : > { %v721_v59 = vpop.eup %720  ;;  %v289_v60 = vmul.f32 %v719_v54, %v281_v28  ;;  %v357_v28 = vmul.f32 %v878_v31, %v356_v8 }
  0x36   : > { %v723_v0 = vpop.eup %722  ;;  %v290_v1 = vmul.f32 %v721_v59, %v282_v30 }
  0x37   : > { %v725_v9 = vpop.eup %724  ;;  %v291_v10 = vmul.f32 %v723_v0, %v283_v32  ;;  %v293_v12 = vsub.f32 2.0, %v289_v60 }
  0x38   : > { %v727_v14 = vpop.eup %726  ;;  %v292_v4 = vmul.f32 %v725_v9, %v284_v33  ;;  %v294_v15 = vsub.f32 2.0, %v290_v1 }
  0x39   : > { %v729_v19 = vpop.eup %728  ;;  %v295_v20 = vsub.f32 2.0, %v291_v10  ;;  %v297_v21 = vmul.f32 %v719_v54, %v293_v12  ;;  %v327_v22 = vmul.f32 0.6931472, %v727_v14 }
  0x3a   : > { %v731_v24 = vpop.eup %730  ;;  %v296_v25 = vsub.f32 2.0, %v292_v4  ;;  %v298_v26 = vmul.f32 %v721_v59, %v294_v15  ;;  %v336_v27 = vmul.f32 0.6931472, %v729_v19  ;;  %v365_v59 = vld [vmem:[#allocation2] sm:$0xff] }
  0x3b   : > { %v733_v30 = vpop.eup %732  ;;  %v299_v32 = vmul.f32 %v723_v0, %v295_v20  ;;  %v309_v33 = vmul.f32 %v305_v55, %v297_v21  ;;  %v333_v34 = vsel %vm912_vm4, %v330_v7, %v327_v22  ;;  %v345_v35 = vmul.f32 0.6931472, %v731_v24 }
  0x3c   : > { %v300_v36 = vmul.f32 %v725_v9, %v296_v25  ;;  %v310_v37 = vmul.f32 %v306_v56, %v298_v26  ;;  %v342_v38 = vsel %vm916_vm5, %v339_v13, %v336_v27  ;;  %v354_v39 = vmul.f32 0.6931472, %v733_v30 }
  0x3d   : > { %v311_v29 = vmul.f32 %v307_v61, %v299_v32  ;;  %v366_v40 = vmul.f32 %v309_v33, %v857_v5  ;;  %v351_v41 = vsel %vm920_vm6, %v348_v23, %v345_v35  ;;  %v361_v31 = vadd.f32 %v333_v34, %v321_v44  ;;  %v375_v5 = vld [vmem:[#allocation3] sm:$0xff] }
  0x3e   : > { %v312_v42 = vmul.f32 %v308_v62, %v300_v36  ;;  %v367_v43 = vmul.f32 %v310_v37, %v860_v6  ;;  %v376_v45 = vadd.f32 %v310_v37, %v309_v33  ;;  %v360_v47 = vsel %vm924_vm7, %v357_v28, %v354_v39  ;;  %v387_v62 = vld [vmem:[#allocation5] sm:$0xff] }
  0x3f   : > { %v368_v48 = vmul.f32 %v311_v29, %v868_v11  ;;  %v362_v49 = vadd.f32 %v342_v38, %v322_v46  ;;  %v363_v52 = vadd.f32 %v351_v41, %v323_v50  ;;  %v364_v56 = vadd.f32 %v360_v47, %v324_v51 }
  0x40   : > { %v369_v53 = vmul.f32 %v312_v42, %v873_v17  ;;  %v370_v54 = vadd.f32 %v367_v43, %v366_v40  ;;  %v377_v55 = vadd.f32 %v376_v45, %v311_v29 }
  0x41   : > { %v388_v57 = vadd.f32 %v362_v49, %v361_v31 }
  0x42   : > { %v371_v58 = vadd.f32 %v370_v54, %v368_v48  ;;  %v378_v44 = vadd.f32 %v377_v55, %v312_v42 }
  0x43   : > { %v389_v60 = vadd.f32 %v388_v57, %v363_v52 }
  0x44   : > { %v372_v6 = vadd.f32 %v371_v58, %v369_v53  ;;  %v379_v61 = vadd.f32 %v378_v44, %v375_v5 }
  0x45   : > { %v390_v63 = vadd.f32 %v389_v60, %v364_v56 }
  0x46   : > { %v373_v0 = vadd.f32 %v372_v6, %v365_v59  ;;  %380 = vst [vmem:[#allocation3] sm:$0xff] %v379_v61 }
  0x47   : > { %v391_v11 = vadd.f32 %v390_v63, %v387_v62 }
  0x48   : > { %374 = vst [vmem:[#allocation2] sm:$0xff] %v373_v0 }
  0x49   : > { %392 = vst [vmem:[#allocation5] sm:$0xff] %v391_v11 }
  0x4a PF: > { %p673_p8 = scmp.le.s32.totalorder %s826_s17, 16 }
  0x4b   : > { %v397_v17 = vlaneseq (!%p673_p8)  ;;  %v402_v46 = vstv (!%p673_p8), %s671_s13  ;;  %v407_v8 = vld [vmem:[%s836_s25] sm:$0xff] (!%p673_p8)  ;;  %v408_v13 = vld [vmem:[%s836_s25 + $0x8] sm:$0xff] (!%p673_p8)  ;;  %v409_v3 = vld [vmem:[%s836_s25 + $0x10] sm:$0xff] (!%p673_p8)  ;;  %v783_v5 = vmov (!%p673_p8), 0.0  }
  0x4c   : > { %396 = sbr.rel (%p673_p8) target bundleno = 137 (0x89), region = 40  ;;  %v410_v14 = vld [vmem:[%s836_s25 + $0x18] sm:$0xff] (!%p673_p8)  ;;  %v411_v24 = vld [vmem:[%s841_s28] sm:$0xff] (!%p673_p8)  ;;  %v412_v25 = vld [vmem:[%s841_s28 + $0x8] sm:$0xff] (!%p673_p8) }
  0x4d   : > { %v398_v50 = vshrl.u32 (!%p673_p8), %v397_v17, 7  ;;  %v413_v32 = vld [vmem:[%s841_s28 + $0x10] sm:$0xff] (!%p673_p8)  ;;  %v414_v38 = vld [vmem:[%s841_s28 + $0x18] sm:$0xff] (!%p673_p8) }
  0x4e   : > { %v559_v31 = vld [vmem:[#allocation4] sm:$0xff] (!%p673_p8) }
  0x4f   : > { %v399_v51 = vadd.s32 (!%p673_p8), 8, %v398_v50  ;;  %v400_v1 = vadd.s32 (!%p673_p8), 16, %v398_v50  ;;  %v401_v7 = vadd.s32 (!%p673_p8), 24, %v398_v50  ;;  %v403_v2 = vadd.s32 (!%p673_p8), %v402_v46, %v398_v50 }
  0x51   : > { %v946_v9 = vadd.s32 (!%p673_p8), %v402_v46, %v399_v51  ;;  %v948_v10 = vadd.s32 (!%p673_p8), %v402_v46, %v400_v1  ;;  %v950_v12 = vadd.s32 (!%p673_p8), %v402_v46, %v401_v7  ;;  %vm415_vm8 = vcmp.lt.s32.totalorder (!%p673_p8), %v403_v2, 16 }
  0x52   : > { %v956_v4 = vsel (!%p673_p8), %vm415_vm8, %v407_v8, 0.0  ;;  %v981_v35 = vsel (!%p673_p8), %vm415_vm8, %v411_v24, 0.0  ;;  %v1011_v56 = vsel (!%p673_p8), %vm415_vm8, 1.0, %v783_v5 }
  0x53   : > { %vm416_vm9 = vcmp.lt.s32.totalorder %v946_v9, 16  ;;  %vm417_vm10 = vcmp.lt.s32.totalorder %v948_v10, 16  ;;  %vm418_vm11 = vcmp.lt.s32.totalorder %v950_v12, 16  ;;  %v427_v15 = vand.u32 2147483647, %v956_v4 }
  0x54   : > { %v964_v16 = vsel %vm416_vm9, %v408_v13, 0.0  ;;  %v968_v18 = vsel %vm417_vm10, %v409_v3, 0.0  ;;  %v972_v19 = vsel %vm418_vm11, %v410_v14, 0.0  ;;  %v985_v36 = vsel %vm416_vm9, %v412_v25, 0.0 }
  0x55   : > { %v428_v20 = vand.u32 2147483647, %v964_v16  ;;  %v429_v21 = vand.u32 2147483647, %v968_v18  ;;  %v430_v22 = vand.u32 2147483647, %v972_v19  ;;  %v560_v39 = vadd.f32 %v985_v36, %v981_v35 }
  0x56   : > { %v431_v23 = vsub.f32 0.0, %v427_v15  ;;  %v992_v29 = vsel %vm417_vm10, %v413_v32, 0.0  ;;  %v997_v41 = vsel %vm418_vm11, %v414_v38, 0.0  ;;  %vm463_vm12 = vcmp.ge.f32.partialorder %v956_v4, 0.0 }
  0x57   : > { %v432_v26 = vsub.f32 0.0, %v428_v20  ;;  %v433_v27 = vsub.f32 0.0, %v429_v21  ;;  %v434_v28 = vsub.f32 0.0, %v430_v22  ;;  %v561_v40 = vadd.f32 %v560_v39, %v992_v29 }
  0x58   : > { %v435_v30 = vmul.f32 1.442695, %v431_v23  ;;  %vm464_vm13 = vcmp.ge.f32.partialorder %v964_v16, 0.0  ;;  %vm465_vm14 = vcmp.ge.f32.partialorder %v968_v18, 0.0  ;;  %v479_v57 = vmul.f32 %v981_v35, %v956_v4 }
  0x59   : > { %v437_v33 = vmul.f32 1.442695, %v432_v26  ;;  %v439_v34 = vmul.f32 1.442695, %v433_v27  ;;  %v441_v37 = vmul.f32 1.442695, %v434_v28  ;;  %v562_v42 = vadd.f32 %v561_v40, %v997_v41 }
  0x5a   : > { %734 = vpow2.f32 %v435_v30  ;;  %v480_v58 = vmul.f32 %v985_v36, %v964_v16  ;;  %v481_v44 = vmul.f32 %v992_v29, %v968_v18  ;;  %v475_v59 = vmax.f32 %v956_v4, 0.0 }
  0x5b   : > { %736 = vpow2.f32 %v437_v33  ;;  %v563_v43 = vadd.f32 %v562_v42, %v559_v31  ;;  %v482_v60 = vmul.f32 %v997_v41, %v972_v19  ;;  %v476_v6 = vmax.f32 %v964_v16, 0.0 }
  0x5c   : > { %738 = vpow2.f32 %v439_v34  ;;  %v477_v62 = vmax.f32 %v968_v18, 0.0  ;;  %v478_v63 = vmax.f32 %v972_v19, 0.0  ;;  %vm466_vm15 = vcmp.ge.f32.partialorder %v972_v19, 0.0 }
  0x5d   : > { %740 = vpow2.f32 %v441_v37  ;;  %564 = vst [vmem:[#allocation4] sm:$0xff] %v563_v43  ;;  %v1031_v11 = vsel %vm416_vm9, 1.0, %v783_v5  ;;  %v1035_v17 = vsel %vm417_vm10, 1.0, %v783_v5  ;;  %v1039_v46 = vsel %vm418_vm11, 1.0, %v783_v5 }
  0x5e   : > { %v483_v50 = vsub.f32 %v475_v59, %v479_v57  ;;  %v484_v1 = vsub.f32 %v476_v6, %v480_v58  ;;  %v485_v9 = vsub.f32 %v477_v62, %v481_v44  ;;  %v486_v13 = vsub.f32 %v478_v63, %v482_v60 }
  0x64   : > { %v735_v45 = vpop.eup %734 }
  0x65   : > { %v1000_v47 = vpop.eup %736  ;;  %v443_v48 = vadd.f32 1.0, %v735_v45  ;;  %v490_v61 = vmul.f32 -0.5, %v735_v45  ;;  %v493_v2 = vand.u32 2147483647, %v735_v45  ;;  %v467_v12 = vsel %vm463_vm12, 1.0, %v735_v45 }
  0x66   : > { %v1002_v49 = vpop.eup %738  ;;  %v444_v52 = vadd.f32 1.0, %v1000_v47  ;;  %v499_v0 = vmul.f32 -0.5, %v1000_v47  ;;  %v502_v10 = vand.u32 2147483647, %v1000_v47  ;;  %v468_v15 = vsel %vm464_vm13, 1.0, %v1000_v47 }
  0x67   : > { %v1005_v53 = vpop.eup %740  ;;  %v445_v54 = vadd.f32 1.0, %v1002_v49  ;;  %742 = vrcp.f32 %v443_v48  ;;  %v508_v51 = vmul.f32 -0.5, %v1002_v49  ;;  %v491_v7 = vadd.f32 1.0, %v490_v61 }
  0x68   : > { %v446_v55 = vadd.f32 1.0, %v1005_v53  ;;  %744 = vrcp.f32 %v444_v52  ;;  %v517_v8 = vmul.f32 -0.5, %v1005_v53  ;;  %v500_v3 = vadd.f32 1.0, %v499_v0 }
  0x69   : > { %746 = vrcp.f32 %v445_v54  ;;  %v511_v20 = vand.u32 2147483647, %v1002_v49  ;;  %v520_v21 = vand.u32 2147483647, %v1005_v53  ;;  %v469_v24 = vsel %vm465_vm14, 1.0, %v1002_v49 }
  0x6a   : > { %748 = vrcp.f32 %v446_v55  ;;  %v470_v25 = vsel %vm466_vm15, 1.0, %v1005_v53  ;;  %v509_v4 = vadd.f32 1.0, %v508_v51  ;;  %v492_v28 = vmul.f32 %v735_v45, %v491_v7 }
  0x6b   : > { %750 = vlog2.f32 %v443_v48  ;;  %vm1057_vm0 = vcmp.lt.f32.partialorder %v493_v2, 0.0004427343  ;;  %v518_v30 = vadd.f32 1.0, %v517_v8  ;;  %v501_v37 = vmul.f32 %v1000_v47, %v500_v3 }
  0x6c   : > { %752 = vlog2.f32 %v444_v52  ;;  %vm1062_vm1 = vcmp.lt.f32.partialorder %v502_v10, 0.0004427343  ;;  %vm1066_vm2 = vcmp.lt.f32.partialorder %v511_v20, 0.0004427343  ;;  %vm1070_vm3 = vcmp.lt.f32.partialorder %v520_v21, 0.0004427343 }
  0x6d   : > { %754 = vlog2.f32 %v445_v54  ;;  %v510_v47 = vmul.f32 %v1002_v49, %v509_v4 }
  0x6e   : > { %756 = vlog2.f32 %v446_v55 }
  0x71   : > { %v743_v14 = vpop.eup %742 }
  0x72   : > { %v745_v22 = vpop.eup %744  ;;  %v451_v23 = vmul.f32 %v743_v14, %v443_v48 }
  0x73   : > { %v747_v26 = vpop.eup %746  ;;  %v452_v27 = vmul.f32 %v745_v22, %v444_v52 }
  0x74   : > { %v749_v32 = vpop.eup %748  ;;  %v453_v33 = vmul.f32 %v747_v26, %v445_v54  ;;  %v455_v34 = vsub.f32 2.0, %v451_v23 }
  0x75   : > { %v751_v19 = vpop.eup %750  ;;  %v454_v38 = vmul.f32 %v749_v32, %v446_v55  ;;  %v456_v39 = vsub.f32 2.0, %v452_v27  ;;  %v519_v55 = vmul.f32 %v1005_v53, %v518_v30 }
  0x76   : > { %v753_v42 = vpop.eup %752  ;;  %v457_v43 = vsub.f32 2.0, %v453_v33  ;;  %v459_v45 = vmul.f32 %v743_v14, %v455_v34  ;;  %v489_v48 = vmul.f32 0.6931472, %v751_v19  ;;  %v565_v33 = vld [vmem:[#allocation5] sm:$0xff] }
  0x77   : > { %v755_v52 = vpop.eup %754  ;;  %v458_v54 = vsub.f32 2.0, %v454_v38  ;;  %v460_v5 = vmul.f32 %v745_v22, %v456_v39  ;;  %v498_v57 = vmul.f32 0.6931472, %v753_v42 }
  0x78   : > { %v757_v58 = vpop.eup %756  ;;  %v461_v44 = vmul.f32 %v747_v26, %v457_v43  ;;  %v471_v59 = vmul.f32 %v467_v12, %v459_v45  ;;  %v495_v60 = vsel %vm1057_vm0, %v492_v28, %v489_v48  ;;  %v507_v6 = vmul.f32 0.6931472, %v755_v52 }
  0x79   : > { %v462_v61 = vmul.f32 %v749_v32, %v458_v54  ;;  %v472_v62 = vmul.f32 %v468_v15, %v460_v5  ;;  %v504_v63 = vsel %vm1062_vm1, %v501_v37, %v498_v57  ;;  %v516_v0 = vmul.f32 0.6931472, %v757_v58 }
  0x7a   : > { %v473_v49 = vmul.f32 %v469_v24, %v461_v44  ;;  %v535_v51 = vmul.f32 %v1011_v56, %v471_v59  ;;  %v513_v7 = vsel %vm1066_vm2, %v510_v47, %v507_v6  ;;  %v523_v53 = vadd.f32 %v495_v60, %v483_v50 }
  0x7b   : > { %v474_v2 = vmul.f32 %v470_v25, %v462_v61  ;;  %v536_v8 = vmul.f32 %v1031_v11, %v472_v62  ;;  %v522_v3 = vsel %vm1070_vm3, %v519_v55, %v516_v0  ;;  %v524_v10 = vadd.f32 %v504_v63, %v484_v1 }
  0x7c   : > { %v537_v14 = vmul.f32 %v1035_v17, %v473_v49  ;;  %v544_v12 = vmul.f32 %v535_v51, %v981_v35  ;;  %v525_v15 = vadd.f32 %v513_v7, %v485_v9  ;;  %v526_v20 = vadd.f32 %v522_v3, %v486_v13  ;;  %v553_v35 = vld [vmem:[#allocation3] sm:$0xff] }
  0x7d   : > { %v538_v21 = vmul.f32 %v1039_v46, %v474_v2  ;;  %v545_v22 = vmul.f32 %v536_v8, %v985_v36  ;;  %v554_v23 = vadd.f32 %v536_v8, %v535_v51  ;;  %v539_v50 = vmul.f32 %v1011_v56, %v523_v53  ;;  %v543_v36 = vld [vmem:[#allocation2] sm:$0xff] }
  0x7e   : > { %v546_v24 = vmul.f32 %v537_v14, %v992_v29  ;;  %v540_v25 = vmul.f32 %v1031_v11, %v524_v10  ;;  %v541_v4 = vmul.f32 %v1035_v17, %v525_v15  ;;  %v542_v9 = vmul.f32 %v1039_v46, %v526_v20 }
  0x7f   : > { %v547_v1 = vmul.f32 %v538_v21, %v997_v41  ;;  %v548_v26 = vadd.f32 %v545_v22, %v544_v12  ;;  %v555_v27 = vadd.f32 %v554_v23, %v537_v14 }
  0x80   : > { %v566_v13 = vadd.f32 %v540_v25, %v539_v50 }
  0x81   : > { %v549_v28 = vadd.f32 %v548_v26, %v546_v24  ;;  %v556_v16 = vadd.f32 %v555_v27, %v538_v21 }
  0x82   : > { %v567_v30 = vadd.f32 %v566_v13, %v541_v4 }
  0x83   : > { %v550_v32 = vadd.f32 %v549_v28, %v547_v1  ;;  %v557_v56 = vadd.f32 %v556_v16, %v553_v35 }
  0x84   : > { %v568_v29 = vadd.f32 %v567_v30, %v542_v9 }
  0x85   : > { %v551_v34 = vadd.f32 %v550_v32, %v543_v36  ;;  %558 = vst [vmem:[#allocation3] sm:$0xff] %v557_v56 }
  0x86   : > { %v569_v11 = vadd.f32 %v568_v29, %v565_v33 }
  0x87   : > { %552 = vst [vmem:[#allocation2] sm:$0xff] %v551_v34 }
  0x88   : > { %570 = vst [vmem:[#allocation5] sm:$0xff] %v569_v11 }
  0x89 PF: > { %v579_v46 = vld [vmem:[#allocation4] sm:$0xff] }
  0x8a   : > { %679 = vst [vmem:[%s831_s21 + $0x10] sm:$0xff] %v579_v46 }
  0x8c   : > { %v576_v17 = vld [vmem:[#allocation3] sm:$0xff] }
  0x8d   : > { %678 = vst [vmem:[%s831_s21 + $0x8] sm:$0xff] %v576_v17 }
  0x8e   : > { %v574_v41 = vld [vmem:[#allocation2] sm:$0xff] }
  0x8f   : > { %575 = vst [vmem:[%s831_s21] sm:$0xff] %v574_v41  ;;  %v582_v37 = vld [vmem:[#allocation5] sm:$0xff] }
  0x90   : > { %680 = vst [vmem:[%s831_s21 + $0x18] sm:$0xff] %v582_v37 }
  0x91 PF: > { %s12_s11 = sadd.s32 1, %s780_s11   ;;  %s1128_s9 = smov %s776_s10 }
  0x92   : > { %p9_p9 = scmp.ge.s32.totalorder %s12_s11, 4   ;;  %s1129_s10 = smov %s1131_s12 }
  0x94   :  { %11 = sbr.rel (!%p9_p9) target bundleno = 2 (0x2), region = 80 }

</bundles_post_ra>
